<compile_context>
chip_gen: v6e
topology: v6e:2x2x1
jax: 0.10.0
libtpu: 0.0.40
codegen_flags: <defaults>
</compile_context>

<pallas_src>
import math
from functools import partial

import jax
import jax.numpy as jnp
from jax import lax
from jax.experimental import pallas as pl
from jax.experimental.pallas import tpu as pltpu


_TM_LINEAR = 512   # row-tile cap for the kv projection (multiple of 8)
_TQ_ATTN = 512     # query-row tile cap for the fused attention kernel
_TH_SR = 8         # output-row tile for the sr-conv kernel


def _round_up(v, m):
    return ((v + m - 1) // m) * m


def _pick_tile_m(m, cap):
    """Row tile: multiple of 8 (or == m), capped, >=2 grid steps when possible."""
    if m <= 8:
        return m
    tm = min(cap, m)
    if tm == m:                      # would give grid=(1,): split for v7x megacore
        tm = _round_up((m + 1) // 2, 8)
    return tm


# ------------------------- sr conv + LayerNorm kernel -------------------------

def _sr_conv_ln_kernel(x_ref, w_ref, b_ref, g_ref, bb_ref, o_ref, *, sr, eps,
                       compute_dtype):
    # x_ref: (1, TH*sr, Wp, sr*C)   w_ref: (sr*sr*C, C)   o_ref: (1, TH, Wp, C)
    th = o_ref.shape[1]
    wp = o_ref.shape[2]
    kc = x_ref.shape[3]            # sr * C
    c_out = w_ref.shape[1]
    for t in range(th):                                   # static, th is small
        acc = jnp.zeros((wp, c_out), jnp.float32)
        for di in range(sr):                              # conv taps along H
            xt = x_ref[0, t * sr + di].astype(compute_dtype)        # (Wp, sr*C)
            acc = acc + jnp.dot(xt, w_ref[di * kc:(di + 1) * kc, :],
                                preferred_element_type=jnp.float32)
        y = acc + b_ref[...].astype(jnp.float32)
        mean = jnp.mean(y, axis=-1, keepdims=True)
        var = jnp.mean(jnp.square(y - mean), axis=-1, keepdims=True)
        y = (y - mean) * lax.rsqrt(var + eps)
        o_ref[0, t] = (y * g_ref[...].astype(jnp.float32)
                       + bb_ref[...].astype(jnp.float32)).astype(o_ref.dtype)


def sr_conv_ln(x, w_sr, b_sr, ln_g, ln_b, H, W, sr, *, out_dtype,
               compute_dtype, eps=1e-5, tile_h=_TH_SR):
    """Stride-sr conv (kernel sr) + LayerNorm over the NHWC map, no patchify copy."""
    B, N, C = x.shape
    Hp, Wp = H // sr, W // sr
    x4 = x.reshape(B, H, Wp, sr * C)                # free contiguous reshape
    th = min(Hp, tile_h)
    grid = (B, pl.cdiv(Hp, th))
    out = pl.pallas_call(
        partial(_sr_conv_ln_kernel, sr=sr, eps=eps, compute_dtype=compute_dtype),
        out_shape=jax.ShapeDtypeStruct((B, Hp, Wp, C), out_dtype),
        grid=grid,
        in_specs=[
            pl.BlockSpec((1, th * sr, Wp, sr * C), lambda b, i: (b, i, 0, 0)),
            pl.BlockSpec((sr * sr * C, C), lambda b, i: (0, 0)),
            pl.BlockSpec((1, C), lambda b, i: (0, 0)),
            pl.BlockSpec((1, C), lambda b, i: (0, 0)),
            pl.BlockSpec((1, C), lambda b, i: (0, 0)),
        ],
        out_specs=pl.BlockSpec((1, th, Wp, C), lambda b, i: (b, i, 0, 0)),
        compiler_params=pltpu.CompilerParams(
            dimension_semantics=("parallel", "parallel")),
    )(x4, w_sr, b_sr, ln_g, ln_b)
    return out.reshape(B, Hp * Wp, C)               # free contiguous reshape


# ------------------------------ kv projection --------------------------------

def _kv_proj_kernel(x_ref, wk_ref, wv_ref, k_ref, v_ref, *, compute_dtype):
    x = x_ref[...].astype(compute_dtype)
    k_ref[...] = jnp.dot(x, wk_ref[...],
                         preferred_element_type=jnp.float32).astype(k_ref.dtype)
    v_ref[...] = jnp.dot(x, wv_ref[...],
                         preferred_element_type=jnp.float32).astype(v_ref.dtype)


def kv_projection(xr, wk, wv, *, out_dtype, compute_dtype, tile_m=_TM_LINEAR):
    """xr:(M,C) -> (k, v) each (M,C), stored in out_dtype (bias-less, qkv_bias=False)."""
    M, C = xr.shape
    tm = _pick_tile_m(M, tile_m)
    grid = (pl.cdiv(M, tm),)
    row = pl.BlockSpec((tm, C), lambda i: (i, 0))
    wgt = pl.BlockSpec((C, C), lambda i: (0, 0))
    return pl.pallas_call(
        partial(_kv_proj_kernel, compute_dtype=compute_dtype),
        out_shape=(jax.ShapeDtypeStruct((M, C), out_dtype),
                   jax.ShapeDtypeStruct((M, C), out_dtype)),
        grid=grid,
        in_specs=[row, wgt, wgt],
        out_specs=(row, row),
        compiler_params=pltpu.CompilerParams(dimension_semantics=("parallel",)),
    )(xr, wk, wv)


# -------------------- fused q-proj + attention + out-proj --------------------

def _fused_attn_kernel(x_ref, wq_ref, k_ref, v_ref, wp_ref, bp_ref, o_ref, q_scr,
                       *, num_heads, head_dim, compute_dtype):
    C = num_heads * head_dim
    xq = x_ref[0].astype(compute_dtype)                               # (TQ, C)
    # q-projection prologue; softmax scale is folded into wq host-side.
    q_scr[...] = jnp.dot(xq, wq_ref[...],
                         preferred_element_type=jnp.float32).astype(compute_dtype)
    acc = jnp.zeros((xq.shape[0], C), jnp.float32)                    # proj accum
    for h in range(num_heads):                                        # static unroll
        s0 = h * head_dim
        qh = q_scr[:, s0:s0 + head_dim]                               # (TQ, hd)
        kh = k_ref[0, :, s0:s0 + head_dim]                            # (Nk, hd)
        vh = v_ref[0, :, s0:s0 + head_dim]                            # (Nk, hd)
        # contract last-with-last: no in-kernel transpose of K
        s = lax.dot_general(qh, kh, (((1,), (1,)), ((), ())),
                            preferred_element_type=jnp.float32)       # (TQ, Nk)
        m = jnp.max(s, axis=-1, keepdims=True)
        p = jnp.exp(s - m)
        denom = jnp.sum(p, axis=-1, keepdims=True)
        oh = jnp.dot(p.astype(compute_dtype), vh,
                     preferred_element_type=jnp.float32)              # (TQ, hd)
        oh = oh * (1.0 / denom)          # normalize AFTER the PV matmul (exact)
        # fused output projection: accumulate oh @ Wproj[h*hd:(h+1)*hd, :]
        acc = acc + jnp.dot(oh.astype(compute_dtype),
                            wp_ref[s0:s0 + head_dim, :],
                            preferred_element_type=jnp.float32)       # (TQ, C)
    o_ref[0] = (acc + bp_ref[...].astype(jnp.float32)).astype(o_ref.dtype)


def fused_attention(x, k, v, wq_scaled, w_proj, b_proj, *, num_heads, out_dtype,
                    compute_dtype, tile_q=_TQ_ATTN):
    """x:(B,N,C) tokens-major, k/v:(B,Nk,C) packed heads -> proj output (B,N,C)."""
    B, N, C = x.shape
    Nk = k.shape[1]
    hd = C // num_heads
    tq = min(N, tile_q)
    grid = (B, pl.cdiv(N, tq))
    return pl.pallas_call(
        partial(_fused_attn_kernel, num_heads=num_heads, head_dim=hd,
                compute_dtype=compute_dtype),
        out_shape=jax.ShapeDtypeStruct((B, N, C), out_dtype),
        grid=grid,
        in_specs=[
            pl.BlockSpec((1, tq, C), lambda b, i: (b, i, 0)),     # x tile
            pl.BlockSpec((C, C), lambda b, i: (0, 0)),            # wq (scaled)
            pl.BlockSpec((1, Nk, C), lambda b, i: (b, 0, 0)),     # k (resident per b)
            pl.BlockSpec((1, Nk, C), lambda b, i: (b, 0, 0)),     # v
            pl.BlockSpec((C, C), lambda b, i: (0, 0)),            # w_proj
            pl.BlockSpec((1, C), lambda b, i: (0, 0)),            # b_proj
        ],
        out_specs=pl.BlockSpec((1, tq, C), lambda b, i: (b, i, 0)),
        scratch_shapes=[pltpu.VMEM((tq, C), compute_dtype)],
        compiler_params=pltpu.CompilerParams(
            dimension_semantics=("parallel", "parallel")),
    )(x, wq_scaled, k, v, w_proj, b_proj)


# ------------------------------ full forward ---------------------------------

def prepare_params(torch_params, *, num_heads, sr_ratio, compute_dtype):
    """One-off host-side prep: transpose to (in,out), fold softmax scale into Wq,
    split Wkv into Wk/Wv, flatten the conv weight, pre-cast weights to compute_dtype."""
    C = torch_params["wq"].shape[0]
    hd = C // num_heads
    scale = hd ** -0.5
    p = {
        "wq_scaled": (torch_params["wq"].T * scale).astype(compute_dtype),
        "wk": torch_params["wkv"][:C].T.astype(compute_dtype),
        "wv": torch_params["wkv"][C:].T.astype(compute_dtype),
        "w_proj": torch_params["w_proj"].T.astype(compute_dtype),
        "b_proj": torch_params["b_proj"].reshape(1, C).astype(jnp.float32),
    }
    if sr_ratio > 1:
        # conv weight (O,I,kh,kw) -> (kh*kw*I, O), row order (di, dj, c_in)
        p["w_sr"] = jnp.transpose(torch_params["w_sr"], (2, 3, 1, 0)).reshape(
            sr_ratio * sr_ratio * C, C).astype(compute_dtype)
        p["b_sr"] = torch_params["b_sr"].reshape(1, C).astype(jnp.float32)
        p["ln_g"] = torch_params["ln_g"].reshape(1, C).astype(jnp.float32)
        p["ln_b"] = torch_params["ln_b"].reshape(1, C).astype(jnp.float32)
    return p


def attention_forward(x, H, W, params, *, num_heads, sr_ratio,
                      compute_dtype=jnp.float32):
    B, N, C = x.shape
    if sr_ratio > 1:
        xr = sr_conv_ln(x, params["w_sr"], params["b_sr"], params["ln_g"],
                        params["ln_b"], H, W, sr_ratio,
                        out_dtype=compute_dtype, compute_dtype=compute_dtype)
        Nk = (H // sr_ratio) * (W // sr_ratio)
    else:
        xr = x
        Nk = N
    k, v = kv_projection(xr.reshape(B * Nk, C), params["wk"], params["wv"],
                         out_dtype=compute_dtype, compute_dtype=compute_dtype)
    k = k.reshape(B, Nk, C)
    v = v.reshape(B, Nk, C)
    # attn_drop = proj_drop = 0.0 -> identities.
    return fused_attention(x, k, v, params["wq_scaled"], params["w_proj"],
                           params["b_proj"], num_heads=num_heads,
                           out_dtype=x.dtype, compute_dtype=compute_dtype)


# ---------------------------- pure-JAX reference -----------------------------

def reference_forward(x, H, W, tp, *, num_heads, sr_ratio):
    B, N, C = x.shape
    hd = C // num_heads
    scale = hd ** -0.5
    q = (x @ tp["wq"].T).reshape(B, N, num_heads, hd).transpose(0, 2, 1, 3)
    if sr_ratio > 1:
        x_ = x.transpose(0, 2, 1).reshape(B, C, H, W)
        x_ = jax.lax.conv_general_dilated(
            x_, tp["w_sr"], (sr_ratio, sr_ratio), "VALID",
            dimension_numbers=("NCHW", "OIHW", "NCHW"),
        ) + tp["b_sr"].reshape(1, C, 1, 1)
        x_ = x_.reshape(B, C, -1).transpose(0, 2, 1)
        mean = x_.mean(-1, keepdims=True)
        var = ((x_ - mean) ** 2).mean(-1, keepdims=True)
        x_ = (x_ - mean) / jnp.sqrt(var + 1e-5) * tp["ln_g"] + tp["ln_b"]
    else:
        x_ = x
    kv = x_ @ tp["wkv"].T
    kv = kv.reshape(B, -1, 2, num_heads, hd).transpose(2, 0, 3, 1, 4)
    k, v = kv[0], kv[1]
    attn = jnp.einsum("bhnd,bhmd->bhnm", q, k) * scale
    attn = jax.nn.softmax(attn, axis=-1)
    out = jnp.einsum("bhnm,bhmd->bhnd", attn, v).transpose(0, 2, 1, 3).reshape(B, N, C)
    return out @ tp["w_proj"].T + tp["b_proj"]


# --------------------------------- driver ------------------------------------

if __name__ == "__main__":
    B, C, H, W = 2, 32, 8, 8
    num_heads, sr_ratio = 4, 2
    N = H * W

    key = jax.random.PRNGKey(0)
    k_x, k_q, k_kv, k_pr, k_sr = jax.random.split(key, 5)

    def trunc_normal(k, shape, std=0.02):
        return std * jax.random.truncated_normal(k, -2.0, 2.0, shape, jnp.float32)

    # Parameters in PyTorch layouts (Linear: (out,in), Conv2d: (O,I,kh,kw))
    torch_params = {
        "wq": trunc_normal(k_q, (C, C)),
        "wkv": trunc_normal(k_kv, (2 * C, C)),
        "w_proj": trunc_normal(k_pr, (C, C)),
        "b_proj": jnp.zeros((C,), jnp.float32),
        "w_sr": jax.random.normal(k_sr, (C, C, sr_ratio, sr_ratio), jnp.float32)
        * math.sqrt(2.0 / (sr_ratio * sr_ratio * C)),
        "b_sr": jnp.zeros((C,), jnp.float32),
        "ln_g": jnp.ones((C,), jnp.float32),
        "ln_b": jnp.zeros((C,), jnp.float32),
    }

    x = jax.random.normal(k_x, (B, N, C), jnp.float32)

    # --- sr_ratio = 2 path (conv + LN + kv + fused attention/proj) ---
    ref = reference_forward(x, H, W, torch_params,
                            num_heads=num_heads, sr_ratio=sr_ratio)
    for cd, tol in ((jnp.float32, 1e-3), (jnp.bfloat16, 5e-2)):
        params = prepare_params(torch_params, num_heads=num_heads,
                                sr_ratio=sr_ratio, compute_dtype=cd)
        out = attention_forward(x, H, W, params, num_heads=num_heads,
                                sr_ratio=sr_ratio, compute_dtype=cd)
        out = jax.block_until_ready(out)
        assert out.shape == (B, N, C)
        assert bool(jnp.all(jnp.isfinite(out)))
        assert jnp.allclose(out, ref, atol=tol, rtol=tol), f"mismatch (sr=2, {cd})"

    # --- sr_ratio = 1 path (kv straight from x) ---
    ref1 = reference_forward(x, H, W, torch_params, num_heads=num_heads, sr_ratio=1)
    params1 = prepare_params(torch_params, num_heads=num_heads, sr_ratio=1,
                             compute_dtype=jnp.float32)
    out1 = attention_forward(x, H, W, params1, num_heads=num_heads, sr_ratio=1,
                             compute_dtype=jnp.float32)
    out1 = jax.block_until_ready(out1)
    assert bool(jnp.all(jnp.isfinite(out1)))
    assert jnp.allclose(out1, ref1, atol=1e-3, rtol=1e-3), "mismatch (sr=1, f32)"

    print("KERNEL_OK")
</pallas_src>

<mosaic_0001>
module attributes {stable_mosaic.version = 11 : i64} {
  func.func @_sr_conv_ln_kernel(%arg0: i32, %arg1: i32, %arg2: memref<1x8x4x64xf32, #tpu.memory_space<vmem>>, %arg3: memref<128x32xf32, #tpu.memory_space<vmem>>, %arg4: memref<1x32xf32, #tpu.memory_space<vmem>>, %arg5: memref<1x32xf32, #tpu.memory_space<vmem>>, %arg6: memref<1x32xf32, #tpu.memory_space<vmem>>, %arg7: memref<1x4x4x32xf32, #tpu.memory_space<vmem>>) attributes {dimension_semantics = [#tpu.dimension_semantics<parallel>, #tpu.dimension_semantics<parallel>], iteration_bounds = array<i64: 2, 1>, scalar_prefetch = 0 : i64, scratch_operands = 0 : i64, tpu.core_type = #tpu.core_type<tc>, window_params = [{transform_indices = @transform_0, window_bounds = array<i64: 1, 8, 4, 64>}, {pipeline_mode = #tpu.pipeline_mode<synchronous>, transform_indices = @transform_1, window_bounds = array<i64: 128, 32>}, {pipeline_mode = #tpu.pipeline_mode<synchronous>, transform_indices = @transform_2, window_bounds = array<i64: 1, 32>}, {pipeline_mode = #tpu.pipeline_mode<synchronous>, transform_indices = @transform_3, window_bounds = array<i64: 1, 32>}, {pipeline_mode = #tpu.pipeline_mode<synchronous>, transform_indices = @transform_4, window_bounds = array<i64: 1, 32>}, {transform_indices = @transform_5, window_bounds = array<i64: 1, 4, 4, 32>}]} {
    %cst = arith.constant 0.000000e+00 : f32
    %0 = vector.broadcast %cst : f32 to vector<4x32xf32>
    %c0 = arith.constant 0 : index
    %c0_0 = arith.constant 0 : index
    %c0_1 = arith.constant 0 : index
    %c0_2 = arith.constant 0 : index
    %1 = vector.load %arg2[%c0, %c0_0, %c0_1, %c0_2] : memref<1x8x4x64xf32, #tpu.memory_space<vmem>>, vector<1x1x4x64xf32>
    %2 = vector.shape_cast %1 : vector<1x1x4x64xf32> to vector<4x64xf32>
    %c0_3 = arith.constant 0 : index
    %c0_4 = arith.constant 0 : index
    %3 = vector.load %arg3[%c0_3, %c0_4] : memref<128x32xf32, #tpu.memory_space<vmem>>, vector<64x32xf32>
    %cst_5 = arith.constant dense<0.000000e+00> : vector<4x32xf32>
    %4 = tpu.matmul %2, %3, %cst_5 {dimension_numbers = #tpu.dot_dimension_numbers<[1], [0], [0], [1], [0, 0, 1, 1], [], []>} : vector<4x64xf32>, vector<64x32xf32>, vector<4x32xf32> -> vector<4x32xf32>
    %5 = arith.addf %0, %4 : vector<4x32xf32>
    %c0_6 = arith.constant 0 : index
    %c1 = arith.constant 1 : index
    %c0_7 = arith.constant 0 : index
    %c0_8 = arith.constant 0 : index
    %6 = vector.load %arg2[%c0_6, %c1, %c0_7, %c0_8] : memref<1x8x4x64xf32, #tpu.memory_space<vmem>>, vector<1x1x4x64xf32>
    %7 = vector.shape_cast %6 : vector<1x1x4x64xf32> to vector<4x64xf32>
    %c64 = arith.constant 64 : index
    %c0_9 = arith.constant 0 : index
    %8 = vector.load %arg3[%c64, %c0_9] : memref<128x32xf32, #tpu.memory_space<vmem>>, vector<64x32xf32>
    %cst_10 = arith.constant dense<0.000000e+00> : vector<4x32xf32>
    %9 = tpu.matmul %7, %8, %cst_10 {dimension_numbers = #tpu.dot_dimension_numbers<[1], [0], [0], [1], [0, 0, 1, 1], [], []>} : vector<4x64xf32>, vector<64x32xf32>, vector<4x32xf32> -> vector<4x32xf32>
    %10 = arith.addf %5, %9 : vector<4x32xf32>
    %c0_11 = arith.constant 0 : index
    %c0_12 = arith.constant 0 : index
    %11 = vector.load %arg4[%c0_11, %c0_12] : memref<1x32xf32, #tpu.memory_space<vmem>>, vector<1x32xf32>
    %12 = vector.broadcast %11 : vector<1x32xf32> to vector<4x32xf32>
    %13 = arith.addf %10, %12 : vector<4x32xf32>
    %cst_13 = arith.constant dense<0.000000e+00> : vector<4xf32>
    %14 = vector.multi_reduction <add>, %13, %cst_13 [1] : vector<4x32xf32> to vector<4xf32>
    %15 = vector.shape_cast %14 : vector<4xf32> to vector<4x1xf32>
    %cst_14 = arith.constant 3.200000e+01 : f32
    %16 = vector.broadcast %cst_14 : f32 to vector<4x1xf32>
    %17 = arith.divf %15, %16 : vector<4x1xf32>
    %18 = vector.broadcast %17 : vector<4x1xf32> to vector<4x32xf32>
    %19 = arith.subf %13, %18 : vector<4x32xf32>
    %20 = arith.mulf %19, %19 : vector<4x32xf32>
    %cst_15 = arith.constant dense<0.000000e+00> : vector<4xf32>
    %21 = vector.multi_reduction <add>, %20, %cst_15 [1] : vector<4x32xf32> to vector<4xf32>
    %22 = vector.shape_cast %21 : vector<4xf32> to vector<4x1xf32>
    %cst_16 = arith.constant 3.200000e+01 : f32
    %23 = vector.broadcast %cst_16 : f32 to vector<4x1xf32>
    %24 = arith.divf %22, %23 : vector<4x1xf32>
    %25 = vector.broadcast %17 : vector<4x1xf32> to vector<4x32xf32>
    %26 = arith.subf %13, %25 : vector<4x32xf32>
    %cst_17 = arith.constant 9.99999974E-6 : f32
    %27 = vector.broadcast %cst_17 : f32 to vector<4x1xf32>
    %28 = arith.addf %24, %27 : vector<4x1xf32>
    %29 = math.rsqrt %28 : vector<4x1xf32>
    %30 = vector.broadcast %29 : vector<4x1xf32> to vector<4x32xf32>
    %31 = arith.mulf %26, %30 : vector<4x32xf32>
    %c0_18 = arith.constant 0 : index
    %c0_19 = arith.constant 0 : index
    %32 = vector.load %arg5[%c0_18, %c0_19] : memref<1x32xf32, #tpu.memory_space<vmem>>, vector<1x32xf32>
    %33 = vector.broadcast %32 : vector<1x32xf32> to vector<4x32xf32>
    %34 = arith.mulf %31, %33 : vector<4x32xf32>
    %c0_20 = arith.constant 0 : index
    %c0_21 = arith.constant 0 : index
    %35 = vector.load %arg6[%c0_20, %c0_21] : memref<1x32xf32, #tpu.memory_space<vmem>>, vector<1x32xf32>
    %36 = vector.broadcast %35 : vector<1x32xf32> to vector<4x32xf32>
    %37 = arith.addf %34, %36 : vector<4x32xf32>
    %c0_22 = arith.constant 0 : index
    %c0_23 = arith.constant 0 : index
    %c0_24 = arith.constant 0 : index
    %c0_25 = arith.constant 0 : index
    %38 = vector.load %arg7[%c0_22, %c0_23, %c0_24, %c0_25] : memref<1x4x4x32xf32, #tpu.memory_space<vmem>>, vector<1x1x4x32xf32>
    %39 = vector.shape_cast %38 : vector<1x1x4x32xf32> to vector<4x32xf32>
    %40 = vector.shape_cast %37 : vector<4x32xf32> to vector<1x1x4x32xf32>
    tpu.vector_store %arg7[%c0_22, %c0_23, %c0_24, %c0_25], %40 {strides = array<i32>} : memref<1x4x4x32xf32, #tpu.memory_space<vmem>>, vector<1x1x4x32xf32>,
    %cst_26 = arith.constant 0.000000e+00 : f32
    %41 = vector.broadcast %cst_26 : f32 to vector<4x32xf32>
    %c0_27 = arith.constant 0 : index
    %c2 = arith.constant 2 : index
    %c0_28 = arith.constant 0 : index
    %c0_29 = arith.constant 0 : index
    %42 = vector.load %arg2[%c0_27, %c2, %c0_28, %c0_29] : memref<1x8x4x64xf32, #tpu.memory_space<vmem>>, vector<1x1x4x64xf32>
    %43 = vector.shape_cast %42 : vector<1x1x4x64xf32> to vector<4x64xf32>
    %c0_30 = arith.constant 0 : index
    %c0_31 = arith.constant 0 : index
    %44 = vector.load %arg3[%c0_30, %c0_31] : memref<128x32xf32, #tpu.memory_space<vmem>>, vector<64x32xf32>
    %cst_32 = arith.constant dense<0.000000e+00> : vector<4x32xf32>
    %45 = tpu.matmul %43, %44, %cst_32 {dimension_numbers = #tpu.dot_dimension_numbers<[1], [0], [0], [1], [0, 0, 1, 1], [], []>} : vector<4x64xf32>, vector<64x32xf32>, vector<4x32xf32> -> vector<4x32xf32>
    %46 = arith.addf %41, %45 : vector<4x32xf32>
    %c0_33 = arith.constant 0 : index
    %c3 = arith.constant 3 : index
    %c0_34 = arith.constant 0 : index
    %c0_35 = arith.constant 0 : index
    %47 = vector.load %arg2[%c0_33, %c3, %c0_34, %c0_35] : memref<1x8x4x64xf32, #tpu.memory_space<vmem>>, vector<1x1x4x64xf32>
    %48 = vector.shape_cast %47 : vector<1x1x4x64xf32> to vector<4x64xf32>
    %c64_36 = arith.constant 64 : index
    %c0_37 = arith.constant 0 : index
    %49 = vector.load %arg3[%c64_36, %c0_37] : memref<128x32xf32, #tpu.memory_space<vmem>>, vector<64x32xf32>
    %cst_38 = arith.constant dense<0.000000e+00> : vector<4x32xf32>
    %50 = tpu.matmul %48, %49, %cst_38 {dimension_numbers = #tpu.dot_dimension_numbers<[1], [0], [0], [1], [0, 0, 1, 1], [], []>} : vector<4x64xf32>, vector<64x32xf32>, vector<4x32xf32> -> vector<4x32xf32>
    %51 = arith.addf %46, %50 : vector<4x32xf32>
    %c0_39 = arith.constant 0 : index
    %c0_40 = arith.constant 0 : index
    %52 = vector.load %arg4[%c0_39, %c0_40] : memref<1x32xf32, #tpu.memory_space<vmem>>, vector<1x32xf32>
    %53 = vector.broadcast %52 : vector<1x32xf32> to vector<4x32xf32>
    %54 = arith.addf %51, %53 : vector<4x32xf32>
    %cst_41 = arith.constant dense<0.000000e+00> : vector<4xf32>
    %55 = vector.multi_reduction <add>, %54, %cst_41 [1] : vector<4x32xf32> to vector<4xf32>
    %56 = vector.shape_cast %55 : vector<4xf32> to vector<4x1xf32>
    %cst_42 = arith.constant 3.200000e+01 : f32
    %57 = vector.broadcast %cst_42 : f32 to vector<4x1xf32>
    %58 = arith.divf %56, %57 : vector<4x1xf32>
    %59 = vector.broadcast %58 : vector<4x1xf32> to vector<4x32xf32>
    %60 = arith.subf %54, %59 : vector<4x32xf32>
    %61 = arith.mulf %60, %60 : vector<4x32xf32>
    %cst_43 = arith.constant dense<0.000000e+00> : vector<4xf32>
    %62 = vector.multi_reduction <add>, %61, %cst_43 [1] : vector<4x32xf32> to vector<4xf32>
    %63 = vector.shape_cast %62 : vector<4xf32> to vector<4x1xf32>
    %cst_44 = arith.constant 3.200000e+01 : f32
    %64 = vector.broadcast %cst_44 : f32 to vector<4x1xf32>
    %65 = arith.divf %63, %64 : vector<4x1xf32>
    %66 = vector.broadcast %58 : vector<4x1xf32> to vector<4x32xf32>
    %67 = arith.subf %54, %66 : vector<4x32xf32>
    %cst_45 = arith.constant 9.99999974E-6 : f32
    %68 = vector.broadcast %cst_45 : f32 to vector<4x1xf32>
    %69 = arith.addf %65, %68 : vector<4x1xf32>
    %70 = math.rsqrt %69 : vector<4x1xf32>
    %71 = vector.broadcast %70 : vector<4x1xf32> to vector<4x32xf32>
    %72 = arith.mulf %67, %71 : vector<4x32xf32>
    %c0_46 = arith.constant 0 : index
    %c0_47 = arith.constant 0 : index
    %73 = vector.load %arg5[%c0_46, %c0_47] : memref<1x32xf32, #tpu.memory_space<vmem>>, vector<1x32xf32>
    %74 = vector.broadcast %73 : vector<1x32xf32> to vector<4x32xf32>
    %75 = arith.mulf %72, %74 : vector<4x32xf32>
    %c0_48 = arith.constant 0 : index
    %c0_49 = arith.constant 0 : index
    %76 = vector.load %arg6[%c0_48, %c0_49] : memref<1x32xf32, #tpu.memory_space<vmem>>, vector<1x32xf32>
    %77 = vector.broadcast %76 : vector<1x32xf32> to vector<4x32xf32>
    %78 = arith.addf %75, %77 : vector<4x32xf32>
    %c0_50 = arith.constant 0 : index
    %c1_51 = arith.constant 1 : index
    %c0_52 = arith.constant 0 : index
    %c0_53 = arith.constant 0 : index
    %79 = vector.load %arg7[%c0_50, %c1_51, %c0_52, %c0_53] : memref<1x4x4x32xf32, #tpu.memory_space<vmem>>, vector<1x1x4x32xf32>
    %80 = vector.shape_cast %79 : vector<1x1x4x32xf32> to vector<4x32xf32>
    %81 = vector.shape_cast %78 : vector<4x32xf32> to vector<1x1x4x32xf32>
    tpu.vector_store %arg7[%c0_50, %c1_51, %c0_52, %c0_53], %81 {strides = array<i32>} : memref<1x4x4x32xf32, #tpu.memory_space<vmem>>, vector<1x1x4x32xf32>,
    %cst_54 = arith.constant 0.000000e+00 : f32
    %82 = vector.broadcast %cst_54 : f32 to vector<4x32xf32>
    %c0_55 = arith.constant 0 : index
    %c4 = arith.constant 4 : index
    %c0_56 = arith.constant 0 : index
    %c0_57 = arith.constant 0 : index
    %83 = vector.load %arg2[%c0_55, %c4, %c0_56, %c0_57] : memref<1x8x4x64xf32, #tpu.memory_space<vmem>>, vector<1x1x4x64xf32>
    %84 = vector.shape_cast %83 : vector<1x1x4x64xf32> to vector<4x64xf32>
    %c0_58 = arith.constant 0 : index
    %c0_59 = arith.constant 0 : index
    %85 = vector.load %arg3[%c0_58, %c0_59] : memref<128x32xf32, #tpu.memory_space<vmem>>, vector<64x32xf32>
    %cst_60 = arith.constant dense<0.000000e+00> : vector<4x32xf32>
    %86 = tpu.matmul %84, %85, %cst_60 {dimension_numbers = #tpu.dot_dimension_numbers<[1], [0], [0], [1], [0, 0, 1, 1], [], []>} : vector<4x64xf32>, vector<64x32xf32>, vector<4x32xf32> -> vector<4x32xf32>
    %87 = arith.addf %82, %86 : vector<4x32xf32>
    %c0_61 = arith.constant 0 : index
    %c5 = arith.constant 5 : index
    %c0_62 = arith.constant 0 : index
    %c0_63 = arith.constant 0 : index
    %88 = vector.load %arg2[%c0_61, %c5, %c0_62, %c0_63] : memref<1x8x4x64xf32, #tpu.memory_space<vmem>>, vector<1x1x4x64xf32>
    %89 = vector.shape_cast %88 : vector<1x1x4x64xf32> to vector<4x64xf32>
    %c64_64 = arith.constant 64 : index
    %c0_65 = arith.constant 0 : index
    %90 = vector.load %arg3[%c64_64, %c0_65] : memref<128x32xf32, #tpu.memory_space<vmem>>, vector<64x32xf32>
    %cst_66 = arith.constant dense<0.000000e+00> : vector<4x32xf32>
    %91 = tpu.matmul %89, %90, %cst_66 {dimension_numbers = #tpu.dot_dimension_numbers<[1], [0], [0], [1], [0, 0, 1, 1], [], []>} : vector<4x64xf32>, vector<64x32xf32>, vector<4x32xf32> -> vector<4x32xf32>
    %92 = arith.addf %87, %91 : vector<4x32xf32>
    %c0_67 = arith.constant 0 : index
    %c0_68 = arith.constant 0 : index
    %93 = vector.load %arg4[%c0_67, %c0_68] : memref<1x32xf32, #tpu.memory_space<vmem>>, vector<1x32xf32>
    %94 = vector.broadcast %93 : vector<1x32xf32> to vector<4x32xf32>
    %95 = arith.addf %92, %94 : vector<4x32xf32>
    %cst_69 = arith.constant dense<0.000000e+00> : vector<4xf32>
    %96 = vector.multi_reduction <add>, %95, %cst_69 [1] : vector<4x32xf32> to vector<4xf32>
    %97 = vector.shape_cast %96 : vector<4xf32> to vector<4x1xf32>
    %cst_70 = arith.constant 3.200000e+01 : f32
    %98 = vector.broadcast %cst_70 : f32 to vector<4x1xf32>
    %99 = arith.divf %97, %98 : vector<4x1xf32>
    %100 = vector.broadcast %99 : vector<4x1xf32> to vector<4x32xf32>
    %101 = arith.subf %95, %100 : vector<4x32xf32>
    %102 = arith.mulf %101, %101 : vector<4x32xf32>
    %cst_71 = arith.constant dense<0.000000e+00> : vector<4xf32>
    %103 = vector.multi_reduction <add>, %102, %cst_71 [1] : vector<4x32xf32> to vector<4xf32>
    %104 = vector.shape_cast %103 : vector<4xf32> to vector<4x1xf32>
    %cst_72 = arith.constant 3.200000e+01 : f32
    %105 = vector.broadcast %cst_72 : f32 to vector<4x1xf32>
    %106 = arith.divf %104, %105 : vector<4x1xf32>
    %107 = vector.broadcast %99 : vector<4x1xf32> to vector<4x32xf32>
    %108 = arith.subf %95, %107 : vector<4x32xf32>
    %cst_73 = arith.constant 9.99999974E-6 : f32
    %109 = vector.broadcast %cst_73 : f32 to vector<4x1xf32>
    %110 = arith.addf %106, %109 : vector<4x1xf32>
    %111 = math.rsqrt %110 : vector<4x1xf32>
    %112 = vector.broadcast %111 : vector<4x1xf32> to vector<4x32xf32>
    %113 = arith.mulf %108, %112 : vector<4x32xf32>
    %c0_74 = arith.constant 0 : index
    %c0_75 = arith.constant 0 : index
    %114 = vector.load %arg5[%c0_74, %c0_75] : memref<1x32xf32, #tpu.memory_space<vmem>>, vector<1x32xf32>
    %115 = vector.broadcast %114 : vector<1x32xf32> to vector<4x32xf32>
    %116 = arith.mulf %113, %115 : vector<4x32xf32>
    %c0_76 = arith.constant 0 : index
    %c0_77 = arith.constant 0 : index
    %117 = vector.load %arg6[%c0_76, %c0_77] : memref<1x32xf32, #tpu.memory_space<vmem>>, vector<1x32xf32>
    %118 = vector.broadcast %117 : vector<1x32xf32> to vector<4x32xf32>
    %119 = arith.addf %116, %118 : vector<4x32xf32>
    %c0_78 = arith.constant 0 : index
    %c2_79 = arith.constant 2 : index
    %c0_80 = arith.constant 0 : index
    %c0_81 = arith.constant 0 : index
    %120 = vector.load %arg7[%c0_78, %c2_79, %c0_80, %c0_81] : memref<1x4x4x32xf32, #tpu.memory_space<vmem>>, vector<1x1x4x32xf32>
    %121 = vector.shape_cast %120 : vector<1x1x4x32xf32> to vector<4x32xf32>
    %122 = vector.shape_cast %119 : vector<4x32xf32> to vector<1x1x4x32xf32>
    tpu.vector_store %arg7[%c0_78, %c2_79, %c0_80, %c0_81], %122 {strides = array<i32>} : memref<1x4x4x32xf32, #tpu.memory_space<vmem>>, vector<1x1x4x32xf32>,
    %cst_82 = arith.constant 0.000000e+00 : f32
    %123 = vector.broadcast %cst_82 : f32 to vector<4x32xf32>
    %c0_83 = arith.constant 0 : index
    %c6 = arith.constant 6 : index
    %c0_84 = arith.constant 0 : index
    %c0_85 = arith.constant 0 : index
    %124 = vector.load %arg2[%c0_83, %c6, %c0_84, %c0_85] : memref<1x8x4x64xf32, #tpu.memory_space<vmem>>, vector<1x1x4x64xf32>
    %125 = vector.shape_cast %124 : vector<1x1x4x64xf32> to vector<4x64xf32>
    %c0_86 = arith.constant 0 : index
    %c0_87 = arith.constant 0 : index
    %126 = vector.load %arg3[%c0_86, %c0_87] : memref<128x32xf32, #tpu.memory_space<vmem>>, vector<64x32xf32>
    %cst_88 = arith.constant dense<0.000000e+00> : vector<4x32xf32>
    %127 = tpu.matmul %125, %126, %cst_88 {dimension_numbers = #tpu.dot_dimension_numbers<[1], [0], [0], [1], [0, 0, 1, 1], [], []>} : vector<4x64xf32>, vector<64x32xf32>, vector<4x32xf32> -> vector<4x32xf32>
    %128 = arith.addf %123, %127 : vector<4x32xf32>
    %c0_89 = arith.constant 0 : index
    %c7 = arith.constant 7 : index
    %c0_90 = arith.constant 0 : index
    %c0_91 = arith.constant 0 : index
    %129 = vector.load %arg2[%c0_89, %c7, %c0_90, %c0_91] : memref<1x8x4x64xf32, #tpu.memory_space<vmem>>, vector<1x1x4x64xf32>
    %130 = vector.shape_cast %129 : vector<1x1x4x64xf32> to vector<4x64xf32>
    %c64_92 = arith.constant 64 : index
    %c0_93 = arith.constant 0 : index
    %131 = vector.load %arg3[%c64_92, %c0_93] : memref<128x32xf32, #tpu.memory_space<vmem>>, vector<64x32xf32>
    %cst_94 = arith.constant dense<0.000000e+00> : vector<4x32xf32>
    %132 = tpu.matmul %130, %131, %cst_94 {dimension_numbers = #tpu.dot_dimension_numbers<[1], [0], [0], [1], [0, 0, 1, 1], [], []>} : vector<4x64xf32>, vector<64x32xf32>, vector<4x32xf32> -> vector<4x32xf32>
    %133 = arith.addf %128, %132 : vector<4x32xf32>
    %c0_95 = arith.constant 0 : index
    %c0_96 = arith.constant 0 : index
    %134 = vector.load %arg4[%c0_95, %c0_96] : memref<1x32xf32, #tpu.memory_space<vmem>>, vector<1x32xf32>
    %135 = vector.broadcast %134 : vector<1x32xf32> to vector<4x32xf32>
    %136 = arith.addf %133, %135 : vector<4x32xf32>
    %cst_97 = arith.constant dense<0.000000e+00> : vector<4xf32>
    %137 = vector.multi_reduction <add>, %136, %cst_97 [1] : vector<4x32xf32> to vector<4xf32>
    %138 = vector.shape_cast %137 : vector<4xf32> to vector<4x1xf32>
    %cst_98 = arith.constant 3.200000e+01 : f32
    %139 = vector.broadcast %cst_98 : f32 to vector<4x1xf32>
    %140 = arith.divf %138, %139 : vector<4x1xf32>
    %141 = vector.broadcast %140 : vector<4x1xf32> to vector<4x32xf32>
    %142 = arith.subf %136, %141 : vector<4x32xf32>
    %143 = arith.mulf %142, %142 : vector<4x32xf32>
    %cst_99 = arith.constant dense<0.000000e+00> : vector<4xf32>
    %144 = vector.multi_reduction <add>, %143, %cst_99 [1] : vector<4x32xf32> to vector<4xf32>
    %145 = vector.shape_cast %144 : vector<4xf32> to vector<4x1xf32>
    %cst_100 = arith.constant 3.200000e+01 : f32
    %146 = vector.broadcast %cst_100 : f32 to vector<4x1xf32>
    %147 = arith.divf %145, %146 : vector<4x1xf32>
    %148 = vector.broadcast %140 : vector<4x1xf32> to vector<4x32xf32>
    %149 = arith.subf %136, %148 : vector<4x32xf32>
    %cst_101 = arith.constant 9.99999974E-6 : f32
    %150 = vector.broadcast %cst_101 : f32 to vector<4x1xf32>
    %151 = arith.addf %147, %150 : vector<4x1xf32>
    %152 = math.rsqrt %151 : vector<4x1xf32>
    %153 = vector.broadcast %152 : vector<4x1xf32> to vector<4x32xf32>
    %154 = arith.mulf %149, %153 : vector<4x32xf32>
    %c0_102 = arith.constant 0 : index
    %c0_103 = arith.constant 0 : index
    %155 = vector.load %arg5[%c0_102, %c0_103] : memref<1x32xf32, #tpu.memory_space<vmem>>, vector<1x32xf32>
    %156 = vector.broadcast %155 : vector<1x32xf32> to vector<4x32xf32>
    %157 = arith.mulf %154, %156 : vector<4x32xf32>
    %c0_104 = arith.constant 0 : index
    %c0_105 = arith.constant 0 : index
    %158 = vector.load %arg6[%c0_104, %c0_105] : memref<1x32xf32, #tpu.memory_space<vmem>>, vector<1x32xf32>
    %159 = vector.broadcast %158 : vector<1x32xf32> to vector<4x32xf32>
    %160 = arith.addf %157, %159 : vector<4x32xf32>
    %c0_106 = arith.constant 0 : index
    %c3_107 = arith.constant 3 : index
    %c0_108 = arith.constant 0 : index
    %c0_109 = arith.constant 0 : index
    %161 = vector.load %arg7[%c0_106, %c3_107, %c0_108, %c0_109] : memref<1x4x4x32xf32, #tpu.memory_space<vmem>>, vector<1x1x4x32xf32>
    %162 = vector.shape_cast %161 : vector<1x1x4x32xf32> to vector<4x32xf32>
    %163 = vector.shape_cast %160 : vector<4x32xf32> to vector<1x1x4x32xf32>
    tpu.vector_store %arg7[%c0_106, %c3_107, %c0_108, %c0_109], %163 {strides = array<i32>} : memref<1x4x4x32xf32, #tpu.memory_space<vmem>>, vector<1x1x4x32xf32>,
    return
  }
  func.func @transform_0(%arg0: i32, %arg1: i32) -> (i32, i32, i32, i32) {
    %c0_i32 = arith.constant 0 : i32
    %c0_i32_0 = arith.constant 0 : i32
    %c0_i32_1 = arith.constant 0 : i32
    return %arg0, %arg1, %c0_i32, %c0_i32_0 : i32, i32, i32, i32
  }
  func.func @transform_1(%arg0: i32, %arg1: i32) -> (i32, i32) {
    %c0_i32 = arith.constant 0 : i32
    %c0_i32_0 = arith.constant 0 : i32
    %c0_i32_1 = arith.constant 0 : i32
    return %c0_i32, %c0_i32_0 : i32, i32
  }
  func.func @transform_2(%arg0: i32, %arg1: i32) -> (i32, i32) {
    %c0_i32 = arith.constant 0 : i32
    %c0_i32_0 = arith.constant 0 : i32
    %c0_i32_1 = arith.constant 0 : i32
    return %c0_i32, %c0_i32_0 : i32, i32
  }
  func.func @transform_3(%arg0: i32, %arg1: i32) -> (i32, i32) {
    %c0_i32 = arith.constant 0 : i32
    %c0_i32_0 = arith.constant 0 : i32
    %c0_i32_1 = arith.constant 0 : i32
    return %c0_i32, %c0_i32_0 : i32, i32
  }
  func.func @transform_4(%arg0: i32, %arg1: i32) -> (i32, i32) {
    %c0_i32 = arith.constant 0 : i32
    %c0_i32_0 = arith.constant 0 : i32
    %c0_i32_1 = arith.constant 0 : i32
    return %c0_i32, %c0_i32_0 : i32, i32
  }
  func.func @transform_5(%arg0: i32, %arg1: i32) -> (i32, i32, i32, i32) {
    %c0_i32 = arith.constant 0 : i32
    %c0_i32_0 = arith.constant 0 : i32
    %c0_i32_1 = arith.constant 0 : i32
    return %arg0, %arg1, %c0_i32, %c0_i32_0 : i32, i32, i32, i32
  }
}

</mosaic_0001>

<bundles_post_ra>
// kernel: tpu_custom_call.1
= control target key start
LH: loop header
LB: loop body
LE: loop exit
PB: predicated region body
PF: predicated region fallthrough
CT: control target
= control target key end

     0   :  { %10 = vsyncpa [#allocation3], 0  ;;  %s2000_s0 = inlined_call_operand.vmem [shape: f32[2,8,4,64], index: 0, kind: input, shape index: {}]   ;;  %s2001_s1 = inlined_call_operand.vmem [shape: f32[128,32], index: 1, kind: input, shape index: {}]   ;;  %s2002_s2 = inlined_call_operand.vmem [shape: f32[1,32], index: 2, kind: input, shape index: {}]   ;;  %s2003_s3 = inlined_call_operand.vmem [shape: f32[1,32], index: 3, kind: input, shape index: {}]   ;;  %s2004_s4 = inlined_call_operand.vmem [shape: f32[1,32], index: 4, kind: input, shape index: {}]   ;;  %s2005_s5 = inlined_call_operand.hbm [shape: f32[2,4,4,32], index: 5, kind: output, shape index: {}]  }
   0x1   :  { %12 = vsyncpa [#allocation3 + $0x1], 0  ;;  %s1619_s18 = smov 0   ;;  %s1621_s19 = smov 0  }
   0x2   :  { %s1623_s20 = smov 0   ;;  %s1625_s21 = smov 0  }
   0x3   :  { %s1627_s22 = smov 0   ;;  %s1629_s23 = smov 0  }
   0x4 LB: > { %s1170_s24 = sadd.s32 4294967295, %s1582_s23   ;;  %s1171_s25 = sadd.s32 4294967294, %s1582_s23   ;;  %s1582_s23 = sphi %s1629_s23, %s18_s23   ;;  %s1578_s22 = sphi %s1627_s22, %s2012_s22   ;;  %s1574_s21 = sphi %s1625_s21, %s2011_s21   ;;  %s1570_s20 = sphi %s1623_s20, %s2010_s20   ;;  %s1566_s19 = sphi %s1621_s19, %s2009_s19   ;;  %s1562_s18 = sphi %s1619_s18, %s2008_s18  }
   0x5   : > { %s30_s26 = sadd.s32 1, %s1578_s22  ;;  %s151_s27 = sadd.s32 1, %s1570_s20 }
   0x6   : > { %p32_p0 = scmp.ge.s32.totalorder %s30_s26, 2  ;;  %p161_p1 = scmp.ne.s32.totalorder %s1570_s20, %s1566_s19 }
   0x7   : > { %p162_p2 = scmp.eq.s32.totalorder %s1170_s24, 1  ;;  %p167_p3 = scmp.ne.s32.totalorder %s1566_s19, %s1562_s18 }
   0x8   : > { %s2014_s26 = smov (%p32_p0, %s30_s26), 0  ;;  %p168_p5 = scmp.eq.s32.totalorder %s1171_s25, 1 }
   0x9   : > { %p1659_p4 = por %p162_p2, %p161_p1  ;;  %s146_s29 = ssub.s32 %s1578_s22, %s2014_s26 }
   0xa   : > { %p1174_p6 = scmp.ge.s32.totalorder %s1582_s23, 1  ;;  %p149_p7 = scmp.eq.s32.totalorder %s146_s29, 0 }
   0xb   : > { %p1666_p8 = por %p168_p5, %p167_p3  ;;  %p211_p9 = scmp.lt.s32.totalorder %s1582_s23, 3 }
   0xc   : > { %s1672_s6 = scalar_select %p149_p7, %s1570_s20, %s151_s27  }
   0xd   : > { %p212_p10 = pnand %p1174_p6, %p211_p9 }
   0xe   : > { %p244_p11 = scmp.lt.s32.totalorder (!%p212_p10), %s1574_s21, 1  ;;  %s240_s16 = sand.u32 (!%p212_p10), 1, %s1566_s19  }
   0xf   : > { %215 = sbr.rel (%p212_p10) target bundleno = 611 (0x263), region = 40  ;;  %s1175_s25 = sshll.u32 (!%p212_p10), %s240_s16, 4 }
  0x10   : > { %s242_s7 = scalar_lea.vmem (!%p212_p10), [#allocation2], %s1175_s25  ;;  %s1955_s13 = scalar_lea.sflag (!%p212_p10), [#allocation3], %s240_s16 }
  0x14   : > { %v1677_v0 = vld [vmem:[%s2001_s1 + $0x78] sm:$0xff]  ;;  %v1584_v2 = vmov 0.0   ;;  %v1689_v3 = vld [vmem:[%s2001_s1 + $0x70] sm:$0xff]  ;;  %v1704_v5 = vld [vmem:[%s2001_s1 + $0x68] sm:$0xff]  ;;  %s245_s8 = scalar_select %p244_p11, %s1574_s21, 1  ;;  %vm273_vm0 = vcmask 523264  }
  0x15   : > { %v1682_v1 = vld [vmem:[%s2001_s1 + $0x38] sm:$0xff]  ;;  %1287 = vmatprep.subr.mxu0 %v1584_v2  ;;  %1306 = vmatprep.subr.mxu1 %v1584_v2  ;;  %v1694_v4 = vld [vmem:[%s2001_s1 + $0x30] sm:$0xff]  ;;  %v1709_v6 = vld [vmem:[%s2001_s1 + $0x28] sm:$0xff]  ;;  %vm1585_vm1 = vmmov 0   ;;  %vm428_vm2 = vcmask 257024  }
  0x16   : > { %1288 = vmatpush3.msra.mxu0 %v1677_v0  ;;  %1307 = vmatpush3.msra.mxu1 %v1682_v1  ;;  %v1718_v7 = vld [vmem:[%s2001_s1 + $0x60] sm:$0xff]  ;;  %v1733_v9 = vld [vmem:[%s2001_s1 + $0x58] sm:$0xff]  ;;  %v1747_v11 = vld [vmem:[%s2001_s1 + $0x50] sm:$0xff]  ;;  %s1213_s17 = sshll.u32 %s245_s8, 5  ;;  %s1214_s8 = sshll.u32 %s1574_s21, 8 }
  0x17   : > { %1289 = vmatprep.subr.mxu0 %v1584_v2  ;;  %1308 = vmatprep.subr.mxu1 %v1584_v2  ;;  %v1723_v8 = vld [vmem:[%s2001_s1 + $0x20] sm:$0xff]  ;;  %v1738_v10 = vld [vmem:[%s2001_s1 + $0x18] sm:$0xff]  ;;  %v1752_v12 = vld [vmem:[%s2001_s1 + $0x10] sm:$0xff]  ;;  %s1773_s9 = scalar_lea.vmem %s2000_s0, %s1213_s17  ;;  %s1948_s12 = scalar_lea.hbm %s2005_s5, %s1214_s8 }
  0x18   : > { %1290 = vmatpush3.msra.mxu0 %v1689_v3  ;;  %1309 = vmatpush3.msra.mxu1 %v1694_v4  ;;  %v1761_v13 = vld [vmem:[%s2001_s1 + $0x48] sm:$0xff]  ;;  %v1780_v15 = vld [vmem:[%s2001_s1 + $0x40] sm:$0xff]  ;;  %v1193_v21 = vld [vmem:[%s1773_s9 + $0x14] sm:$0xf]  ;;  %s1586_s21 = smov [#allocation2]  }
  0x19   : > { %1291 = vmatprep.subr.mxu0 %v1584_v2  ;;  %1310 = vmatprep.subr.mxu1 %v1584_v2  ;;  %v1766_v14 = vld [vmem:[%s2001_s1 + $0x8] sm:$0xff]  ;;  %v1787_v16 = vld [vmem:[%s2001_s1] sm:$0xff]  ;;  %v1192_v22 = vld [vmem:[%s1773_s9 + $0x10] sm:$0xf]  ;;  %s1510_s15 = sshll.u32 %s1586_s21, 4  ;;  %s1511_s15 = int_to_ptr.vmem [resolvable:$false] %s1510_s15 }
  0x1a   : > { %1292 = vmatpush3.msra.mxu0 %v1704_v5  ;;  %1311 = vmatpush3.msra.mxu1 %v1709_v6  ;;  %v1178_v17 = vld [vmem:[%s1773_s9 + $0x4] sm:$0xf]  ;;  %v254_v18 = vld [vmem:[%s1773_s9] sm:$0xf]  ;;  %v1185_v19 = vld [vmem:[%s1773_s9 + $0xc] sm:$0xf] }
  0x1b   : > { %1293 = vmatprep.subr.mxu0 %v1584_v2  ;;  %1312 = vmatprep.subr.mxu1 %v1584_v2  ;;  %v1184_v20 = vld [vmem:[%s1773_s9 + $0x8] sm:$0xf]  ;;  %v1201_v23 = vld [vmem:[%s1773_s9 + $0x1c] sm:$0xf]  ;;  %v1200_v24 = vld [vmem:[%s1773_s9 + $0x18] sm:$0xf] }
  0x1c   : > { %1294 = vmatpush3.msra.mxu0 %v1718_v7  ;;  %1313 = vmatpush3.msra.mxu1 %v1723_v8  ;;  %v1181_v27 = vld [vmem:[%s2002_s2] ss:$0 sm:$0xff]  ;;  %s1091_s9 = sshll.u32 %s242_s7, 4  ;;  %s1512_s17 = scalar_lea.vmem %s1511_s15, 512  ;;  %s1950_s9 = int_to_ptr.vmem [resolvable:$true] %s1091_s9 }
  0x1d   : > { %1295 = vmatprep.subr.mxu0 %v1584_v2  ;;  %1314 = vmatprep.subr.mxu1 %v1584_v2  ;;  %s1506_s14 = scalar_lea.vmem %s1950_s9, 256  ;;  %p1513_p1 = scmp.lt.s32.totalorder %s1950_s9, %s1511_s15 }
  0x1e   : > { %1296 = vmatpush3.msra.mxu0 %v1733_v9  ;;  %1315 = vmatpush3.msra.mxu1 %v1738_v10  ;;  %p1507_p12 = scmp.ne.s32.totalorder %s1950_s9, %s1506_s14  ;;  %p1514_p2 = scmp.lt.s32.totalorder %s1512_s17, %s1506_s14 }
  0x1f   : > { %1297 = vmatprep.subr.mxu0 %v1584_v2  ;;  %1316 = vmatprep.subr.mxu1 %v1584_v2 }
  0x20   : > { %1298 = vmatpush3.msra.mxu0 %v1747_v11  ;;  %1317 = vmatpush3.msra.mxu1 %v1752_v12  ;;  %p1508_p13 = pnand %p1507_p12, %p1659_p4  ;;  %p1515_p3 = por %p1514_p2, %p1513_p1 }
  0x21   : > { %1299 = vmatprep.subr.mxu0 %v1584_v2  ;;  %1318 = vmatprep.subr.mxu1 %v1584_v2 }
  0x22   : > { %1300 = vmatpush3.msra.mxu0 %v1761_v13  ;;  %1319 = vmatpush3.msra.mxu1 %v1766_v14  ;;  %p1509_p0 = pneg %p1508_p13 }
  0x23   : > { %1301 = vmatprep.subr.mxu0 %v1584_v2  ;;  %1320 = vmatprep.subr.mxu1 %v1584_v2 }
  0x24   : > { %1302 = vmatpush3.msra.mxu0 %v1780_v15  ;;  %1303 = vmatprep.mubr.msk.f32.mxu0 %vm1585_vm1, %v1584_v2  ;;  %p1516_p5 = pnand %p1515_p3, %p1509_p0 }
  0x25   : > { %1321 = vmatpush3.msra.mxu1 %v1787_v16  ;;  %1322 = vmatprep.mubr.msk.f32.mxu1 %vm1585_vm1, %v1584_v2 }
  0x26   : > { %1304 = vmatmul.mubr.msk.f32.vlgmr.msra.gmra.mxu0 %vm273_vm0, %v1178_v17  ;;  %1323 = vmatmul.mubr.msk.f32.vlgmr.msra.gmra.mxu1 %vm273_vm0, %v254_v18  ;;  %v1183_v18 = vld [vmem:[%s2004_s4] ss:$0 sm:$0xff] }
  0x27   : > { %1325 = vmatprep.subr.mxu0 %v1584_v2  ;;  %1344 = vmatprep.subr.mxu1 %v1584_v2 }
  0x28   : > { %1326 = vmatpush3.msra.mxu0 %v1677_v0  ;;  %1345 = vmatpush3.msra.mxu1 %v1682_v1 }
  0x29   : > { %1327 = vmatprep.subr.mxu0 %v1584_v2  ;;  %1346 = vmatprep.subr.mxu1 %v1584_v2 }
  0x2a   : > { %1328 = vmatpush3.msra.mxu0 %v1689_v3  ;;  %1347 = vmatpush3.msra.mxu1 %v1694_v4 }
  0x2b   : > { %1329 = vmatprep.subr.mxu0 %v1584_v2  ;;  %1348 = vmatprep.subr.mxu1 %v1584_v2 }
  0x2c   : > { %1330 = vmatpush3.msra.mxu0 %v1704_v5  ;;  %1349 = vmatpush3.msra.mxu1 %v1709_v6 }
  0x2d   : > { %1331 = vmatprep.subr.mxu0 %v1584_v2  ;;  %1350 = vmatprep.subr.mxu1 %v1584_v2 }
  0x2e   : > { %1332 = vmatpush3.msra.mxu0 %v1718_v7  ;;  %1351 = vmatpush3.msra.mxu1 %v1723_v8 }
  0x2f   : > { %1333 = vmatprep.subr.mxu0 %v1584_v2  ;;  %1352 = vmatprep.subr.mxu1 %v1584_v2 }
  0x30   : > { %1334 = vmatpush3.msra.mxu0 %v1733_v9  ;;  %1353 = vmatpush3.msra.mxu1 %v1738_v10 }
  0x31   : > { %1335 = vmatprep.subr.mxu0 %v1584_v2  ;;  %1354 = vmatprep.subr.mxu1 %v1584_v2 }
  0x32   : > { %1336 = vmatpush3.msra.mxu0 %v1747_v11  ;;  %1355 = vmatpush3.msra.mxu1 %v1752_v12 }
  0x33   : > { %1337 = vmatprep.subr.mxu0 %v1584_v2  ;;  %1356 = vmatprep.subr.mxu1 %v1584_v2 }
  0x34   : > { %1338 = vmatpush3.msra.mxu0 %v1761_v13  ;;  %1357 = vmatpush3.msra.mxu1 %v1766_v14 }
  0x35   : > { %1339 = vmatprep.subr.mxu0 %v1584_v2  ;;  %1358 = vmatprep.subr.mxu1 %v1584_v2 }
  0x36   : > { %1340 = vmatpush3.msra.mxu0 %v1780_v15  ;;  %1341 = vmatprep.mubr.msk.f32.mxu0 %vm1585_vm1, %v1584_v2 }
  0x37   : > { %1359 = vmatpush3.msra.mxu1 %v1787_v16  ;;  %1360 = vmatprep.mubr.msk.f32.mxu1 %vm1585_vm1, %v1584_v2 }
  0x38   : > { %1342 = vmatmul.mubr.msk.f32.vlgmr.msra.gmra.mxu0 %vm273_vm0, %v1185_v19  ;;  %1361 = vmatmul.mubr.msk.f32.vlgmr.msra.gmra.mxu1 %vm273_vm0, %v1184_v20 }
  0x39   : > { %1363 = vmatprep.subr.mxu0 %v1584_v2  ;;  %1382 = vmatprep.subr.mxu1 %v1584_v2 }
  0x3a   : > { %1364 = vmatpush3.msra.mxu0 %v1677_v0  ;;  %1383 = vmatpush3.msra.mxu1 %v1682_v1 }
  0x3b   : > { %1365 = vmatprep.subr.mxu0 %v1584_v2  ;;  %1384 = vmatprep.subr.mxu1 %v1584_v2 }
  0x3c   : > { %1366 = vmatpush3.msra.mxu0 %v1689_v3  ;;  %1385 = vmatpush3.msra.mxu1 %v1694_v4 }
  0x3d   : > { %1367 = vmatprep.subr.mxu0 %v1584_v2  ;;  %1386 = vmatprep.subr.mxu1 %v1584_v2 }
  0x3e   : > { %1368 = vmatpush3.msra.mxu0 %v1704_v5  ;;  %1387 = vmatpush3.msra.mxu1 %v1709_v6 }
  0x3f   : > { %1369 = vmatprep.subr.mxu0 %v1584_v2  ;;  %1388 = vmatprep.subr.mxu1 %v1584_v2 }
  0x40   : > { %1370 = vmatpush3.msra.mxu0 %v1718_v7  ;;  %1389 = vmatpush3.msra.mxu1 %v1723_v8 }
  0x41   : > { %1371 = vmatprep.subr.mxu0 %v1584_v2  ;;  %1390 = vmatprep.subr.mxu1 %v1584_v2 }
  0x42   : > { %1372 = vmatpush3.msra.mxu0 %v1733_v9  ;;  %1391 = vmatpush3.msra.mxu1 %v1738_v10 }
  0x43   : > { %1373 = vmatprep.subr.mxu0 %v1584_v2  ;;  %1392 = vmatprep.subr.mxu1 %v1584_v2 }
  0x44   : > { %1374 = vmatpush3.msra.mxu0 %v1747_v11  ;;  %1393 = vmatpush3.msra.mxu1 %v1752_v12 }
  0x45   : > { %1375 = vmatprep.subr.mxu0 %v1584_v2  ;;  %1394 = vmatprep.subr.mxu1 %v1584_v2 }
  0x46   : > { %1376 = vmatpush3.msra.mxu0 %v1761_v13  ;;  %1395 = vmatpush3.msra.mxu1 %v1766_v14 }
  0x47   : > { %1377 = vmatprep.subr.mxu0 %v1584_v2  ;;  %1396 = vmatprep.subr.mxu1 %v1584_v2 }
  0x48   : > { %1378 = vmatpush3.msra.mxu0 %v1780_v15  ;;  %1379 = vmatprep.mubr.msk.f32.mxu0 %vm1585_vm1, %v1584_v2 }
  0x49   : > { %1397 = vmatpush3.msra.mxu1 %v1787_v16  ;;  %1398 = vmatprep.mubr.msk.f32.mxu1 %vm1585_vm1, %v1584_v2 }
  0x4a   : > { %1380 = vmatmul.mubr.msk.f32.vlgmr.msra.gmra.mxu0 %vm273_vm0, %v1193_v21  ;;  %1399 = vmatmul.mubr.msk.f32.vlgmr.msra.gmra.mxu1 %vm273_vm0, %v1192_v22 }
  0x4b   : > { %1401 = vmatprep.subr.mxu0 %v1584_v2  ;;  %1420 = vmatprep.subr.mxu1 %v1584_v2 }
  0x4c   : > { %1402 = vmatpush3.msra.mxu0 %v1677_v0  ;;  %1421 = vmatpush3.msra.mxu1 %v1682_v1 }
  0x4d   : > { %1403 = vmatprep.subr.mxu0 %v1584_v2  ;;  %1422 = vmatprep.subr.mxu1 %v1584_v2 }
  0x4e   : > { %1404 = vmatpush3.msra.mxu0 %v1689_v3  ;;  %1423 = vmatpush3.msra.mxu1 %v1694_v4 }
  0x4f   : > { %1405 = vmatprep.subr.mxu0 %v1584_v2  ;;  %1424 = vmatprep.subr.mxu1 %v1584_v2 }
  0x50   : > { %1406 = vmatpush3.msra.mxu0 %v1704_v5  ;;  %1425 = vmatpush3.msra.mxu1 %v1709_v6 }
  0x51   : > { %1407 = vmatprep.subr.mxu0 %v1584_v2  ;;  %1426 = vmatprep.subr.mxu1 %v1584_v2 }
  0x52   : > { %1408 = vmatpush3.msra.mxu0 %v1718_v7  ;;  %1427 = vmatpush3.msra.mxu1 %v1723_v8 }
  0x53   : > { %1409 = vmatprep.subr.mxu0 %v1584_v2  ;;  %1428 = vmatprep.subr.mxu1 %v1584_v2 }
  0x54   : > { %1410 = vmatpush3.msra.mxu0 %v1733_v9  ;;  %1429 = vmatpush3.msra.mxu1 %v1738_v10 }
  0x55   : > { %1411 = vmatprep.subr.mxu0 %v1584_v2  ;;  %1430 = vmatprep.subr.mxu1 %v1584_v2 }
  0x56   : > { %1412 = vmatpush3.msra.mxu0 %v1747_v11  ;;  %1431 = vmatpush3.msra.mxu1 %v1752_v12 }
  0x57   : > { %1413 = vmatprep.subr.mxu0 %v1584_v2  ;;  %1432 = vmatprep.subr.mxu1 %v1584_v2 }
  0x58   : > { %1414 = vmatpush3.msra.mxu0 %v1761_v13  ;;  %1433 = vmatpush3.msra.mxu1 %v1766_v14  ;;  %v1182_v14 = vld [vmem:[%s2003_s3] ss:$0 sm:$0xff] }
  0x59   : > { %1415 = vmatprep.subr.mxu0 %v1584_v2  ;;  %1434 = vmatprep.subr.mxu1 %v1584_v2 }
  0x5a   : > { %1416 = vmatpush3.msra.mxu0 %v1780_v15  ;;  %1417 = vmatprep.mubr.msk.f32.mxu0 %vm1585_vm1, %v1584_v2 }
  0x5b   : > { %1435 = vmatpush3.msra.mxu1 %v1787_v16  ;;  %1436 = vmatprep.mubr.msk.f32.mxu1 %vm1585_vm1, %v1584_v2 }
  0x5c   : > { %1418 = vmatmul.mubr.msk.f32.vlgmr.msra.gmra.mxu0 %vm273_vm0, %v1201_v23  ;;  %1437 = vmatmul.mubr.msk.f32.vlgmr.msra.gmra.mxu1 %vm273_vm0, %v1200_v24 }
  0xe6   : > { %v343_v25 = vpop.f32.mrf.mxu0  ;;  %v416_v26 = vpop.f32.mrf.mxu1 }
  0xe7   : > { %v417_v28 = vadd.f32 %v416_v26, %v343_v25 }
  0xe8   : > { %v1305_v29 = vpop.f32.mrf.mxu0  ;;  %v1324_v30 = vpop.f32.mrf.mxu1 }
  0xe9   : > { %v427_v31 = vadd.f32 %v1181_v27, %v417_v28 }
  0xeb   : > { %v429_v32 = vsel %vm428_vm2, %v427_v31, 0.0 }
  0xec   : > { %430 = vadd.xlane.f32.xlu0 %v429_v32 }
  0xf8   : > { %v549_v33 = vpop.f32.mrf.mxu0  ;;  %v622_v34 = vpop.f32.mrf.mxu1 }
  0xf9   : > { %v623_v35 = vadd.f32 %v622_v34, %v549_v33 }
  0xfa   : > { %v1343_v36 = vpop.f32.mrf.mxu0  ;;  %v1362_v37 = vpop.f32.mrf.mxu1 }
  0xfb   : > { %v633_v38 = vadd.f32 %v1181_v27, %v623_v35 }
  0xfd   : > { %v634_v39 = vsel %vm428_vm2, %v633_v38, 0.0 }
  0xfe   : > { %635 = vadd.xlane.f32.xlu0 %v634_v39 }
 0x10a   : > { %v754_v40 = vpop.f32.mrf.mxu0  ;;  %v827_v41 = vpop.f32.mrf.mxu1 }
 0x10b   : > { %v828_v42 = vadd.f32 %v827_v41, %v754_v40 }
 0x10c   : > { %v1381_v43 = vpop.f32.mrf.mxu0  ;;  %v1400_v44 = vpop.f32.mrf.mxu1 }
 0x10d   : > { %v838_v45 = vadd.f32 %v1181_v27, %v828_v42 }
 0x10f   : > { %v839_v46 = vsel %vm428_vm2, %v838_v45, 0.0 }
 0x110   : > { %840 = vadd.xlane.f32.xlu1 %v839_v46 }
 0x11c   : > { %v959_v47 = vpop.f32.mrf.mxu0  ;;  %v1032_v48 = vpop.f32.mrf.mxu1 }
 0x11d   : > { %v1033_v49 = vadd.f32 %v1032_v48, %v959_v47 }
 0x11e   : > { %v1419_v50 = vpop.f32.mrf.mxu0  ;;  %v1438_v51 = vpop.f32.mrf.mxu1 }
 0x11f   : > { %v1043_v52 = vadd.f32 %v1181_v27, %v1033_v49 }
 0x121   : > { %v1044_v53 = vsel %vm428_vm2, %v1043_v52, 0.0 }
 0x122   : > { %1045 = vadd.xlane.f32.xlu1 %v1044_v53 }
 0x175   : > { %v431_v54 = vpop.xlane.xlu0 %430 }
 0x176   : > { %v433_v55 = vmul.f32 0.03125, %v431_v54 }
 0x178   : > { %v434_v56 = vsub.f32 %v427_v31, %v433_v55 }
 0x17a   : > { %v435_v57 = vmul.f32 %v434_v56, %v434_v56 }
 0x17c   : > { %v436_v58 = vsel %vm428_vm2, %v435_v57, 0.0 }
 0x17d   : > { %437 = vadd.xlane.f32.xlu0 %v436_v58 }
 0x187   : > { %v636_v59 = vpop.xlane.xlu0 %635 }
 0x188   : > { %v637_v60 = vmul.f32 0.03125, %v636_v59 }
 0x18a   : > { %v638_v61 = vsub.f32 %v633_v38, %v637_v60 }
 0x18c   : > { %v639_v62 = vmul.f32 %v638_v61, %v638_v61 }
 0x18e   : > { %v640_v63 = vsel %vm428_vm2, %v639_v62, 0.0 }
 0x18f   : > { %641 = vadd.xlane.f32.xlu1 %v640_v63 }
 0x199   : > { %v841_v0 = vpop.xlane.xlu1 %840 }
 0x19a   : > { %v842_v1 = vmul.f32 0.03125, %v841_v0 }
 0x19c   : > { %v843_v2 = vsub.f32 %v838_v45, %v842_v1 }
 0x19e   : > { %v844_v3 = vmul.f32 %v843_v2, %v843_v2 }
 0x1a0   : > { %v845_v4 = vsel %vm428_vm2, %v844_v3, 0.0 }
 0x1a1   : > { %846 = vadd.xlane.f32.xlu0 %v845_v4 }
 0x1ab   : > { %v1046_v5 = vpop.xlane.xlu1 %1045 }
 0x1ac   : > { %v1047_v6 = vmul.f32 0.03125, %v1046_v5 }
 0x1ae   : > { %v1048_v7 = vsub.f32 %v1043_v52, %v1047_v6 }
 0x1b0   : > { %v1049_v8 = vmul.f32 %v1048_v7, %v1048_v7 }
 0x1b2   : > { %v1050_v9 = vsel %vm428_vm2, %v1049_v8, 0.0 }
 0x1b3   : > { %1051 = vadd.xlane.f32.xlu1 %v1050_v9 }
 0x206   : > { %v438_v10 = vpop.xlane.xlu0 %437 }
 0x207   : > { %v439_v11 = vmul.f32 0.03125, %v438_v10 }
 0x209   : > { %v440_v12 = vadd.f32 1e-05, %v439_v11 }
 0x20b   : > { %1498 = vrsqrt.f32 %v440_v12 }
 0x218   : > { %v1499_v13 = vpop.eup %1498  ;;  %v642_v15 = vpop.xlane.xlu1 %641 }
 0x219   : > { %v442_v16 = vmul.f32 %v1499_v13, %v434_v56  ;;  %v643_v17 = vmul.f32 0.03125, %v642_v15 }
 0x21b   : > { %v450_v19 = vmul.f32 %v1182_v14, %v442_v16  ;;  %v644_v20 = vadd.f32 1e-05, %v643_v17 }
 0x21d   : > { %v458_v21 = vadd.f32 %v1183_v18, %v450_v19  ;;  %1500 = vrsqrt.f32 %v644_v20 }
 0x21f   : > { %459 = vst.msk [vmem:[%s242_s7] sm:$0xf] %vm428_vm2, %v458_v21 }
 0x22a   : > { %v1501_v22 = vpop.eup %1500  ;;  %v847_v23 = vpop.xlane.xlu0 %846 }
 0x22b   : > { %v646_v24 = vmul.f32 %v1501_v22, %v638_v61  ;;  %v848_v25 = vmul.f32 0.03125, %v847_v23 }
 0x22d   : > { %v654_v26 = vmul.f32 %v1182_v14, %v646_v24  ;;  %v849_v27 = vadd.f32 1e-05, %v848_v25 }
 0x22f   : > { %v662_v28 = vadd.f32 %v1183_v18, %v654_v26  ;;  %1502 = vrsqrt.f32 %v849_v27 }
 0x231   : > { %1191 = vst.msk [vmem:[%s242_s7 + $0x4] sm:$0xf] %vm428_vm2, %v662_v28 }
 0x23c   : > { %v1503_v29 = vpop.eup %1502  ;;  %v1052_v30 = vpop.xlane.xlu1 %1051 }
 0x23d   : > { %v851_v31 = vmul.f32 %v1503_v29, %v843_v2  ;;  %v1053_v32 = vmul.f32 0.03125, %v1052_v30 }
 0x23f   : > { %v859_v33 = vmul.f32 %v1182_v14, %v851_v31  ;;  %v1054_v34 = vadd.f32 1e-05, %v1053_v32 }
 0x241   : > { %v867_v35 = vadd.f32 %v1183_v18, %v859_v33  ;;  %1504 = vrsqrt.f32 %v1054_v34 }
 0x243   : > { %1199 = vst.msk [vmem:[%s242_s7 + $0x8] sm:$0xf] %vm428_vm2, %v867_v35 }
 0x24e   : > { %v1505_v36 = vpop.eup %1504 }
 0x24f   : > { %v1056_v37 = vmul.f32 %v1505_v36, %v1048_v7 }
 0x251   : > { %v1064_v38 = vmul.f32 %v1182_v14, %v1056_v37 }
 0x253   : > { %v1072_v39 = vadd.f32 %v1183_v18, %v1064_v38 }
 0x255   : > { %1207 = vst.msk [vmem:[%s242_s7 + $0xc] sm:$0xf] %vm428_vm2, %v1072_v39 }
 0x256   : > { %1519 = shalt.err (!%p1516_p5)
}
 0x257   : > { %s1520_s16 = scalar_lea.hbm %s1948_s12, 256  ;;  %s1524_s27 = scalar_lea.hbm %s2005_s5, 512 }
 0x258   : > { %p1521_p6 = scmp.ne.s32.totalorder %s1948_s12, %s1520_s16  ;;  %p1525_p10 = scmp.lt.s32.totalorder %s1948_s12, %s2005_s5 }
 0x259   : > { %p1526_p11 = scmp.lt.s32.totalorder %s1524_s27, %s1520_s16 }
 0x25a   : > { %p1522_p7 = pnand %p1521_p6, %p1659_p4 }
 0x25b   : > { %p1527_p12 = por %p1526_p11, %p1525_p10 }
 0x25c   : > { %p1523_p9 = pneg %p1522_p7 }
 0x25e   : > { %p1528_p13 = pnand %p1527_p12, %p1523_p9 }
 0x260   : > { %1531 = shalt.err (!%p1528_p13)
}
 0x261   : > { %s1587_s8 = smov 64   ;;  %s1588_s10 = smov 4  }
 0x262   : > { %1439 = dma.vmem_to_hbm [thread:$0]  (%p1659_p4), %s1950_s9, 256, %s1948_s12, %s1955_s13, %s1587_s8, %s1587_s8, %s1588_s10  }
 0x263 PF: > { %p1445_p0 = scmp.ge.s32.totalorder %s1582_s23, 2  ;;  %s1106_s11 = sand.u32 1, %s1562_s18  }
 0x264   : > { %s1107_s14 = scalar_lea.sflag [#allocation3], %s1106_s11 }
 0x265   : > { %p1442_p1 = pnand %p1445_p0, %p1666_p8 }
 0x267   : > { %p1443_p2 = pneg %p1442_p1 }
 0x269   : > { %1557 = dma.done.wait (%p1443_p2), %s1107_s14, 256  }
 0x26a   : > { %1559 = vsyncadd (%p1443_p2), %s1107_s14, 4294967040  ;;  %s18_s23 = sadd.s32 1, %s1582_s23   ;;  %s2008_s18 = smov %s1566_s19 }
 0x26b   : > { %p15_p3 = scmp.ge.s32.totalorder %s18_s23, 4   ;;  %s2009_s19 = smov %s1570_s20 }
 0x26c   : > { %s2010_s20 = smov %s1672_s6  ;;  %s2011_s21 = smov %s1578_s22 }
 0x26d   : > { %s2012_s22 = smov %s2014_s26  ;;  %17 = sbr.rel (!%p15_p3) target bundleno = 4 (0x4), region = 85 }
 0x272   :  { %1112 = vsyncpa [#allocation3], 1 }
 0x273   :  { %1114 = vsyncpa [#allocation3 + $0x1], 1 }

</bundles_post_ra>
